<compile_context>
chip_gen: v7x
topology: tpu7x:2x2x1
jax: 0.10.0
libtpu: 0.0.40
codegen_flags: <defaults>
</compile_context>

<pallas_src>
import jax
import jax.numpy as jnp
from jax import lax
from jax.experimental import pallas as pl
from jax.experimental.pallas import tpu as pltpu


# ----------------------------------------------------------------------------
# Fused kernel: encoder K-step + (on the last step) directional loss epilogue.
# ----------------------------------------------------------------------------
def _fused_kernel(src_ref, tgt_ref, w_ref, bias_ref, txt_ref, neg_ref,
                  o_ref, acc_ref):
    """
    src_ref : (B,  tk) f32   K-slice of flattened src images (raw, affine folded into W)
    tgt_ref : (B,  tk) f32   K-slice of flattened tgt images
    w_ref   : (tk, D)  bf16  affine-folded encoder weight K-slice (scale * W)
    bias_ref: (1,  D)  f32   shift @ W  (resident)
    txt_ref : (2B, D)  f32   src text rows [0,B), tgt text rows [B,2B) (unit-norm)
    neg_ref : (Nn, D)  f32   negative text features (unit-norm)
    o_ref   : (1, 1)   f32   scalar loss
    acc_ref : (2B, D)  f32   VMEM accumulator, persists across K steps
    """
    k = pl.program_id(0)
    nk = pl.num_programs(0)
    B = src_ref.shape[0]

    @pl.when(k == 0)
    def _init():
        # preprocess shift folded into the encoder bias: acc starts at shift @ W.
        acc_ref[...] = jnp.broadcast_to(bias_ref[...], acc_ref.shape)

    # Affine scale is folded into w_ref, so the images go straight to the MXU after a
    # bf16 cast.  Stack src+tgt so W streams once and the LHS fills an 8-sublane tile.
    x = jnp.concatenate([src_ref[...], tgt_ref[...]], axis=0).astype(jnp.bfloat16)
    acc_ref[...] += jnp.dot(x, w_ref[...], preferred_element_type=jnp.float32)

    @pl.when(k == nk - 1)
    def _finalize():
        eps = jnp.float32(1e-8)

        # get_image_features(norm=True): feat /= feat.norm(dim=-1) (eps-free, as torch)
        feats = acc_ref[...]                                            # (2B, D)
        feats = feats * lax.rsqrt(jnp.sum(feats * feats, axis=-1, keepdims=True))
        src_i = feats[:B]                                               # (B, D)
        tgt_i = feats[B:]                                               # (B, D)

        txt = txt_ref[...]
        src_t = txt[:B]                                                 # (B, D)
        tgt_t = txt[B:]                                                 # (B, D)
        neg_t = neg_ref[...]                                            # (Nn, D)

        # target_direction = (tgt_text - src_text) / ||.||_{dim=-1}   (no eps in torch)
        td = tgt_t - src_t
        td = td * lax.rsqrt(jnp.sum(td * td, axis=-1, keepdims=True))

        # negative_direction: torch builds (B, D, Nn) and normalises over its LAST dim,
        # i.e. the Nn axis.  Stored here as (B, Nn, D) -> normalise over axis=1.
        # (At real Nn/D rewrite as MXU matmuls via the ||neg-src||^2 expansion; at Nn=4
        #  this is negligible VPU/XLU work in the one-shot epilogue.)
        nd = neg_t[None, :, :] - src_t[:, None, :]                      # (B, Nn, D)
        nd = nd * lax.rsqrt(jnp.sum(nd * nd, axis=1, keepdims=True))

        # edit_direction = (tgt_img - src_img); /= (||.|| + 1e-7)
        ed = tgt_i - src_i
        ed = ed / (jnp.sqrt(jnp.sum(ed * ed, axis=-1, keepdims=True)) + jnp.float32(1e-7))

        # CosineSimilarity over D (eps=1e-8).  td is exactly unit-norm so its norm
        # factor is dropped; ed's norm is kept (it is != 1 because of the +1e-7).
        ed_n = jnp.sqrt(jnp.sum(ed * ed, axis=-1, keepdims=True))       # (B, 1)
        logit_target = jnp.sum(td * ed, axis=-1, keepdims=True) / \
            jnp.maximum(ed_n, eps)                                      # (B, 1)

        nd_n = jnp.sqrt(jnp.sum(nd * nd, axis=-1))                      # (B, Nn)
        logit_negative = jnp.sum(nd * ed[:, None, :], axis=-1) / \
            jnp.maximum(nd_n * ed_n, eps)                               # (B, Nn)

        # -mean(log(pp / (pp + pn))) computed exactly in log-domain (no approx recip
        # feeding log).  Logits are in [-1, 1] so exp cannot overflow.
        pn = jnp.sum(jnp.exp(logit_negative), axis=-1, keepdims=True)   # (B, 1)
        lse = jnp.log(jnp.exp(logit_target) + pn)                       # (B, 1)
        loss = jnp.mean(lse - logit_target)
        o_ref[...] = loss.reshape(1, 1)


def _pick_k_tile(F, D, B, budget_bytes=20 * 1024 * 1024):
    """Largest K tile whose double-buffered streamed inputs fit the VMEM budget."""
    def stream_footprint(tk):
        # 2 buffers x (src (B,tk) f32 + tgt (B,tk) f32 + W (tk,D) bf16)
        return 2 * (2 * B * tk * 4 + tk * D * 2)

    if stream_footprint(F) <= budget_bytes:
        return F                       # single grid step — no pipeline overhead at all
    candidates = [tk for tk in range(128, F, 128) if F % tk == 0]
    for tk in sorted(candidates, reverse=True):
        if stream_footprint(tk) <= budget_bytes:
            return tk
    return candidates[0] if candidates else F


def image_bind_loss_forward(src_img, tgt_img, src_text, tgt_text, neg_text,
                            w_enc, scale_flat, shift_flat, lambda_direction=1.0):
    """Equivalent of ImageBindLoss.forward (lambda_naive=0) with a synthetic encoder."""
    B = src_img.shape[0]
    F, D = w_enc.shape
    Nn = neg_text.shape[0]

    # Fold the preprocess affine ((x+1)/2 - mean)/std == x*scale + shift into the
    # encoder weight:  (x*scale + shift) @ W == x @ (scale * W) + shift @ W.
    # One-time (F, D) op, amortised across calls; kills the per-step VPU cast chain
    # and two K-sliced DMA streams inside the kernel.
    w_scaled = (scale_flat.reshape(F, 1) * w_enc).astype(jnp.bfloat16)      # (F, D)
    bias = (shift_flat.reshape(1, F) @ w_enc).astype(jnp.float32)           # (1, D)

    # Images stay f32 and un-concatenated: no extra wrapper-side HBM round trip.
    src_flat = src_img.reshape(B, F)
    tgt_flat = tgt_img.reshape(B, F)
    txt = jnp.concatenate([src_text, tgt_text], axis=0).astype(jnp.float32)  # (2B, D) tiny
    neg = neg_text.astype(jnp.float32)

    tk = _pick_k_tile(F, D, B)
    nk = F // tk

    loss = pl.pallas_call(
        _fused_kernel,
        out_shape=jax.ShapeDtypeStruct((1, 1), jnp.float32),
        grid=(nk,),
        in_specs=[
            pl.BlockSpec((B, tk), lambda k: (0, k)),        # src images  (K-sliced, f32)
            pl.BlockSpec((B, tk), lambda k: (0, k)),        # tgt images  (K-sliced, f32)
            pl.BlockSpec((tk, D), lambda k: (k, 0)),        # folded encoder W (bf16)
            pl.BlockSpec((1, D), lambda k: (0, 0)),         # folded bias   (resident)
            pl.BlockSpec((2 * B, D), lambda k: (0, 0)),     # src|tgt text  (resident)
            pl.BlockSpec((Nn, D), lambda k: (0, 0)),        # negative text (resident)
        ],
        out_specs=pl.BlockSpec((1, 1), lambda k: (0, 0)),
        scratch_shapes=[pltpu.VMEM((2 * B, D), jnp.float32)],
        compiler_params=pltpu.CompilerParams(
            # single grid axis is the F reduction -> sequential ("arbitrary").
            dimension_semantics=("arbitrary",),
            # well above the ~20 MiB stream budget, below v7x's 64 MiB physical VMEM.
            vmem_limit_bytes=48 * 1024 * 1024,
        ),
    )(src_flat, tgt_flat, w_scaled, bias, txt, neg)
    return lambda_direction * loss[0, 0]


if __name__ == "__main__":
    key = jax.random.PRNGKey(0)
    k_src, k_tgt, k_w, k_txt = jax.random.split(key, 4)

    B, C, H, W = 4, 3, 16, 16          # small synthetic images (NCHW)
    D = 128                            # embedding dim (lane-aligned)
    Nn = 4                             # number of negative classes
    F = C * H * W                      # 768

    src_img = jax.random.uniform(k_src, (B, C, H, W), jnp.float32, -1.0, 1.0)
    tgt_img = jax.random.uniform(k_tgt, (B, C, H, W), jnp.float32, -1.0, 1.0)

    # deterministic synthetic encoder weights
    w_enc = jax.random.normal(k_w, (F, D), jnp.float32) * 0.02

    # preprocess affine, folded per channel:  ((x+1)/2 - mean)/std = x*scale + shift
    mean = jnp.array([0.48145466, 0.4578275, 0.40821073], jnp.float32)
    std = jnp.array([0.26862954, 0.26130258, 0.27577711], jnp.float32)
    scale_c = 1.0 / (2.0 * std)
    shift_c = (1.0 - 2.0 * mean) / (2.0 * std)
    scale_flat = jnp.repeat(scale_c, H * W).reshape(1, F)   # channel-major, matches NCHW flatten
    shift_flat = jnp.repeat(shift_c, H * W).reshape(1, F)

    # synthetic precomputed (normalised) text class features -> get_text_features()
    class_names = ["photo", "sketch", "painting", "night", "winter", "fire", "ice", "gold"]
    text_table = jax.random.normal(k_txt, (len(class_names), D), jnp.float32)
    text_table = text_table / jnp.linalg.norm(text_table, axis=-1, keepdims=True)
    name_to_idx = {n: i for i, n in enumerate(class_names)}

    source_class = ["photo", "photo", "photo", "photo"]          # len B
    target_class = ["sketch", "painting", "night", "winter"]     # len B
    negative_class = ["fire", "ice", "gold", "sketch"]           # len Nn

    src_text = text_table[jnp.array([name_to_idx[n] for n in source_class])]    # (B, D)
    tgt_text = text_table[jnp.array([name_to_idx[n] for n in target_class])]    # (B, D)
    neg_text = text_table[jnp.array([name_to_idx[n] for n in negative_class])]  # (Nn, D)

    fwd = jax.jit(image_bind_loss_forward)
    loss = fwd(src_img, tgt_img, src_text, tgt_text, neg_text,
               w_enc, scale_flat, shift_flat)
    jax.block_until_ready(loss)
    assert jnp.isfinite(loss)
    print("KERNEL_OK")
</pallas_src>

<mosaic_0001>
module attributes {stable_mosaic.version = 11 : i64} {
  func.func @_fused_kernel(%arg0: i32, %arg1: memref<4x768xf32, #tpu.memory_space<vmem>>, %arg2: memref<4x768xf32, #tpu.memory_space<vmem>>, %arg3: memref<768x128xbf16, #tpu.memory_space<vmem>>, %arg4: memref<1x128xf32, #tpu.memory_space<vmem>>, %arg5: memref<8x128xf32, #tpu.memory_space<vmem>>, %arg6: memref<4x128xf32, #tpu.memory_space<vmem>>, %arg7: memref<1x1xf32, #tpu.memory_space<vmem>>, %arg8: memref<8x128xf32, #tpu.memory_space<vmem>>) attributes {dimension_semantics = [#tpu.dimension_semantics<arbitrary>], iteration_bounds = array<i64: 1>, scalar_prefetch = 0 : i64, scratch_operands = 1 : i64, tpu.core_type = #tpu.core_type<tc>, window_params = [{transform_indices = @transform_0, window_bounds = array<i64: 4, 768>}, {transform_indices = @transform_1, window_bounds = array<i64: 4, 768>}, {transform_indices = @transform_2, window_bounds = array<i64: 768, 128>}, {pipeline_mode = #tpu.pipeline_mode<synchronous>, transform_indices = @transform_3, window_bounds = array<i64: 1, 128>}, {pipeline_mode = #tpu.pipeline_mode<synchronous>, transform_indices = @transform_4, window_bounds = array<i64: 8, 128>}, {pipeline_mode = #tpu.pipeline_mode<synchronous>, transform_indices = @transform_5, window_bounds = array<i64: 4, 128>}, {pipeline_mode = #tpu.pipeline_mode<synchronous>, transform_indices = @transform_6, window_bounds = array<i64: 1, 1>}]} {
    %c0_i32 = arith.constant 0 : i32
    %0 = arith.cmpi eq, %arg0, %c0_i32 : i32
    %1 = arith.extui %0 : i1 to i32
    %c0_i32_0 = arith.constant 0 : i32
    %2 = arith.cmpi ne, %1, %c0_i32_0 : i32
    scf.if %2 {
      %c0_12 = arith.constant 0 : index
      %c0_13 = arith.constant 0 : index
      %15 = vector.load %arg4[%c0_12, %c0_13] : memref<1x128xf32, #tpu.memory_space<vmem>>, vector<1x128xf32>
      %16 = vector.shape_cast %15 : vector<1x128xf32> to vector<1x128xf32>
      %17 = vector.broadcast %16 : vector<1x128xf32> to vector<8x128xf32>
      %c0_14 = arith.constant 0 : index
      %c0_15 = arith.constant 0 : index
      %18 = vector.load %arg8[%c0_14, %c0_15] : memref<8x128xf32, #tpu.memory_space<vmem>>, vector<8x128xf32>
      tpu.vector_store %arg8[%c0_14, %c0_15], %17 {strides = array<i32>} : memref<8x128xf32, #tpu.memory_space<vmem>>, vector<8x128xf32>,
    } else {
    }
    %c0 = arith.constant 0 : index
    %c0_1 = arith.constant 0 : index
    %3 = vector.load %arg1[%c0, %c0_1] : memref<4x768xf32, #tpu.memory_space<vmem>>, vector<4x768xf32>
    %c0_2 = arith.constant 0 : index
    %c0_3 = arith.constant 0 : index
    %4 = vector.load %arg2[%c0_2, %c0_3] : memref<4x768xf32, #tpu.memory_space<vmem>>, vector<4x768xf32>
    %5 = tpu.concatenate %3, %4 in 0 : vector<4x768xf32>, vector<4x768xf32> -> vector<8x768xf32>
    %6 = arith.truncf %5 : vector<8x768xf32> to vector<8x768xbf16>
    %c0_4 = arith.constant 0 : index
    %c0_5 = arith.constant 0 : index
    %7 = vector.load %arg8[%c0_4, %c0_5] : memref<8x128xf32, #tpu.memory_space<vmem>>, vector<8x128xf32>
    %c0_6 = arith.constant 0 : index
    %c0_7 = arith.constant 0 : index
    %8 = vector.load %arg3[%c0_6, %c0_7] : memref<768x128xbf16, #tpu.memory_space<vmem>>, vector<768x128xbf16>
    %cst = arith.constant dense<0.000000e+00> : vector<8x128xf32>
    %9 = tpu.matmul %6, %8, %cst {dimension_numbers = #tpu.dot_dimension_numbers<[1], [0], [0], [1], [0, 0, 1, 1], [], []>} : vector<8x768xbf16>, vector<768x128xbf16>, vector<8x128xf32> -> vector<8x128xf32>
    %10 = arith.addf %7, %9 : vector<8x128xf32>
    %c0_8 = arith.constant 0 : index
    %c0_9 = arith.constant 0 : index
    %11 = vector.load %arg8[%c0_8, %c0_9] : memref<8x128xf32, #tpu.memory_space<vmem>>, vector<8x128xf32>
    tpu.vector_store %arg8[%c0_8, %c0_9], %10 {strides = array<i32>} : memref<8x128xf32, #tpu.memory_space<vmem>>, vector<8x128xf32>,
    %c0_i32_10 = arith.constant 0 : i32
    %12 = arith.cmpi eq, %arg0, %c0_i32_10 : i32
    %13 = arith.extui %12 : i1 to i32
    %c0_i32_11 = arith.constant 0 : i32
    %14 = arith.cmpi ne, %13, %c0_i32_11 : i32
    scf.if %14 {
      %c0_12 = arith.constant 0 : index
      %c0_13 = arith.constant 0 : index
      %15 = vector.load %arg8[%c0_12, %c0_13] : memref<8x128xf32, #tpu.memory_space<vmem>>, vector<8x128xf32>
      %16 = arith.mulf %15, %15 : vector<8x128xf32>
      %cst_14 = arith.constant dense<0.000000e+00> : vector<8xf32>
      %17 = vector.multi_reduction <add>, %16, %cst_14 [1] : vector<8x128xf32> to vector<8xf32>
      %18 = vector.shape_cast %17 : vector<8xf32> to vector<8x1xf32>
      %19 = math.rsqrt %18 : vector<8x1xf32>
      %20 = vector.broadcast %19 : vector<8x1xf32> to vector<8x128xf32>
      %21 = arith.mulf %15, %20 : vector<8x128xf32>
      %22 = vector.extract_strided_slice %21 {offsets = [0, 0], sizes = [4, 128], strides = [1, 1]} : vector<8x128xf32> to vector<4x128xf32>
      %23 = vector.extract_strided_slice %21 {offsets = [4, 0], sizes = [4, 128], strides = [1, 1]} : vector<8x128xf32> to vector<4x128xf32>
      %c0_15 = arith.constant 0 : index
      %c0_16 = arith.constant 0 : index
      %24 = vector.load %arg5[%c0_15, %c0_16] : memref<8x128xf32, #tpu.memory_space<vmem>>, vector<8x128xf32>
      %25 = vector.extract_strided_slice %24 {offsets = [0, 0], sizes = [4, 128], strides = [1, 1]} : vector<8x128xf32> to vector<4x128xf32>
      %26 = vector.extract_strided_slice %24 {offsets = [4, 0], sizes = [4, 128], strides = [1, 1]} : vector<8x128xf32> to vector<4x128xf32>
      %c0_17 = arith.constant 0 : index
      %c0_18 = arith.constant 0 : index
      %27 = vector.load %arg6[%c0_17, %c0_18] : memref<4x128xf32, #tpu.memory_space<vmem>>, vector<4x128xf32>
      %28 = arith.subf %26, %25 : vector<4x128xf32>
      %29 = arith.mulf %28, %28 : vector<4x128xf32>
      %cst_19 = arith.constant dense<0.000000e+00> : vector<4xf32>
      %30 = vector.multi_reduction <add>, %29, %cst_19 [1] : vector<4x128xf32> to vector<4xf32>
      %31 = vector.shape_cast %30 : vector<4xf32> to vector<4x1xf32>
      %32 = math.rsqrt %31 : vector<4x1xf32>
      %33 = vector.broadcast %32 : vector<4x1xf32> to vector<4x128xf32>
      %34 = arith.mulf %28, %33 : vector<4x128xf32>
      %35 = vector.shape_cast %27 : vector<4x128xf32> to vector<1x4x128xf32>
      %36 = vector.shape_cast %25 : vector<4x128xf32> to vector<4x1x128xf32>
      %37 = vector.broadcast %35 : vector<1x4x128xf32> to vector<4x4x128xf32>
      %38 = vector.broadcast %36 : vector<4x1x128xf32> to vector<4x4x128xf32>
      %39 = arith.subf %37, %38 : vector<4x4x128xf32>
      %40 = arith.mulf %39, %39 : vector<4x4x128xf32>
      %cst_20 = arith.constant dense<0.000000e+00> : vector<4x128xf32>
      %41 = vector.multi_reduction <add>, %40, %cst_20 [1] : vector<4x4x128xf32> to vector<4x128xf32>
      %42 = vector.shape_cast %41 : vector<4x128xf32> to vector<4x1x128xf32>
      %43 = math.rsqrt %42 : vector<4x1x128xf32>
      %44 = vector.broadcast %43 : vector<4x1x128xf32> to vector<4x4x128xf32>
      %45 = arith.mulf %39, %44 : vector<4x4x128xf32>
      %46 = arith.subf %23, %22 : vector<4x128xf32>
      %47 = arith.mulf %46, %46 : vector<4x128xf32>
      %cst_21 = arith.constant dense<0.000000e+00> : vector<4xf32>
      %48 = vector.multi_reduction <add>, %47, %cst_21 [1] : vector<4x128xf32> to vector<4xf32>
      %49 = vector.shape_cast %48 : vector<4xf32> to vector<4x1xf32>
      %50 = math.sqrt %49 : vector<4x1xf32>
      %cst_22 = arith.constant 1.000000e-07 : f32
      %51 = vector.broadcast %cst_22 : f32 to vector<4x1xf32>
      %52 = arith.addf %50, %51 : vector<4x1xf32>
      %53 = vector.broadcast %52 : vector<4x1xf32> to vector<4x128xf32>
      %54 = arith.divf %46, %53 : vector<4x128xf32>
      %55 = arith.mulf %54, %54 : vector<4x128xf32>
      %cst_23 = arith.constant dense<0.000000e+00> : vector<4xf32>
      %56 = vector.multi_reduction <add>, %55, %cst_23 [1] : vector<4x128xf32> to vector<4xf32>
      %57 = vector.shape_cast %56 : vector<4xf32> to vector<4x1xf32>
      %58 = math.sqrt %57 : vector<4x1xf32>
      %59 = arith.mulf %34, %54 : vector<4x128xf32>
      %cst_24 = arith.constant dense<0.000000e+00> : vector<4xf32>
      %60 = vector.multi_reduction <add>, %59, %cst_24 [1] : vector<4x128xf32> to vector<4xf32>
      %61 = vector.shape_cast %60 : vector<4xf32> to vector<4x1xf32>
      %cst_25 = arith.constant 9.99999993E-9 : f32
      %62 = vector.broadcast %cst_25 : f32 to vector<4x1xf32>
      %63 = arith.maximumf %58, %62 : vector<4x1xf32>
      %64 = arith.divf %61, %63 : vector<4x1xf32>
      %65 = arith.mulf %45, %45 : vector<4x4x128xf32>
      %cst_26 = arith.constant dense<0.000000e+00> : vector<4x4xf32>
      %66 = vector.multi_reduction <add>, %65, %cst_26 [2] : vector<4x4x128xf32> to vector<4x4xf32>
      %67 = math.sqrt %66 : vector<4x4xf32>
      %68 = vector.shape_cast %54 : vector<4x128xf32> to vector<4x1x128xf32>
      %69 = vector.broadcast %68 : vector<4x1x128xf32> to vector<4x4x128xf32>
      %70 = arith.mulf %45, %69 : vector<4x4x128xf32>
      %cst_27 = arith.constant dense<0.000000e+00> : vector<4x4xf32>
      %71 = vector.multi_reduction <add>, %70, %cst_27 [2] : vector<4x4x128xf32> to vector<4x4xf32>
      %72 = vector.broadcast %58 : vector<4x1xf32> to vector<4x4xf32>
      %73 = arith.mulf %67, %72 : vector<4x4xf32>
      %cst_28 = arith.constant 9.99999993E-9 : f32
      %74 = vector.broadcast %cst_28 : f32 to vector<4x4xf32>
      %75 = arith.maximumf %73, %74 : vector<4x4xf32>
      %76 = arith.divf %71, %75 : vector<4x4xf32>
      %77 = math.exp %76 : vector<4x4xf32>
      %cst_29 = arith.constant dense<0.000000e+00> : vector<4xf32>
      %78 = vector.multi_reduction <add>, %77, %cst_29 [1] : vector<4x4xf32> to vector<4xf32>
      %79 = vector.shape_cast %78 : vector<4xf32> to vector<4x1xf32>
      %80 = math.exp %64 : vector<4x1xf32>
      %81 = arith.addf %80, %79 : vector<4x1xf32>
      %82 = math.log %81 : vector<4x1xf32>
      %83 = arith.subf %82, %64 : vector<4x1xf32>
      %84 = vector.shape_cast %83 : vector<4x1xf32> to vector<1x4x1xf32>
      %cst_30 = arith.constant dense<0.000000e+00> : vector<1xf32>
      %85 = vector.multi_reduction <add>, %84, %cst_30 [1, 2] : vector<1x4x1xf32> to vector<1xf32>
      %86 = vector.shape_cast %85 : vector<1xf32> to vector<1x1x1xf32>
      %87 = vector.extract %86[0, 0, 0] : f32 from vector<1x1x1xf32>
      %cst_31 = arith.constant 4.000000e+00 : f32
      %88 = arith.divf %87, %cst_31 : f32
      %89 = vector.broadcast %88 : f32 to vector<1x1xf32>
      %c0_32 = arith.constant 0 : index
      %c0_33 = arith.constant 0 : index
      %90 = vector.load %arg7[%c0_32, %c0_33] : memref<1x1xf32, #tpu.memory_space<vmem>>, vector<1x1xf32>
      tpu.vector_store %arg7[%c0_32, %c0_33], %89 {strides = array<i32>} : memref<1x1xf32, #tpu.memory_space<vmem>>, vector<1x1xf32>,
    } else {
    }
    return
  }
  func.func @transform_0(%arg0: i32) -> (i32, i32) {
    %c0_i32 = arith.constant 0 : i32
    %c0_i32_0 = arith.constant 0 : i32
    return %c0_i32, %arg0 : i32, i32
  }
  func.func @transform_1(%arg0: i32) -> (i32, i32) {
    %c0_i32 = arith.constant 0 : i32
    %c0_i32_0 = arith.constant 0 : i32
    return %c0_i32, %arg0 : i32, i32
  }
  func.func @transform_2(%arg0: i32) -> (i32, i32) {
    %c0_i32 = arith.constant 0 : i32
    %c0_i32_0 = arith.constant 0 : i32
    return %arg0, %c0_i32 : i32, i32
  }
  func.func @transform_3(%arg0: i32) -> (i32, i32) {
    %c0_i32 = arith.constant 0 : i32
    %c0_i32_0 = arith.constant 0 : i32
    %c0_i32_1 = arith.constant 0 : i32
    return %c0_i32, %c0_i32_0 : i32, i32
  }
  func.func @transform_4(%arg0: i32) -> (i32, i32) {
    %c0_i32 = arith.constant 0 : i32
    %c0_i32_0 = arith.constant 0 : i32
    %c0_i32_1 = arith.constant 0 : i32
    return %c0_i32, %c0_i32_0 : i32, i32
  }
  func.func @transform_5(%arg0: i32) -> (i32, i32) {
    %c0_i32 = arith.constant 0 : i32
    %c0_i32_0 = arith.constant 0 : i32
    %c0_i32_1 = arith.constant 0 : i32
    return %c0_i32, %c0_i32_0 : i32, i32
  }
  func.func @transform_6(%arg0: i32) -> (i32, i32) {
    %c0_i32 = arith.constant 0 : i32
    %c0_i32_0 = arith.constant 0 : i32
    %c0_i32_1 = arith.constant 0 : i32
    return %c0_i32, %c0_i32_0 : i32, i32
  }
}

</mosaic_0001>

<bundles_post_ra>
// kernel: image_bind_loss_forward.1
= control target key start
LH: loop header
LB: loop body
LE: loop exit
PB: predicated region body
PF: predicated region fallthrough
CT: control target
= control target key end

     0   :  { %vm61_vm0 = vcmask 1043456   ;;  %s1518_s0 = inlined_call_operand.vmem [shape: f32[4,768], index: 0, kind: input, shape index: {}]   ;;  %s1519_s1 = inlined_call_operand.vmem [shape: f32[4,768], index: 1, kind: input, shape index: {}]   ;;  %s1520_s2 = inlined_call_operand.vmem [shape: bf16[768,128], index: 2, kind: input, shape index: {}]   ;;  %s1521_s3 = inlined_call_operand.vmem [shape: f32[1,128], index: 3, kind: input, shape index: {}]   ;;  %s1522_s4 = inlined_call_operand.vmem [shape: f32[8,128], index: 4, kind: input, shape index: {}]   ;;  %s1523_s5 = inlined_call_operand.vmem [shape: f32[4,128], index: 5, kind: input, shape index: {}]   ;;  %s1524_s6 = inlined_call_operand.hbm [shape: f32[1,1], index: 6, kind: output, shape index: {}]  }
   0x1   :  { %v1088_v0 = vld [vmem:[%s1520_s2 + $0x40] sm:$0xff]   ;;  %v1092_v4 = vld [vmem:[%s1520_s2 + $0x48] sm:$0xff]   ;;  %v1096_v8 = vld [vmem:[%s1520_s2 + $0x50] sm:$0xff]  }
   0x2   :  { %v1089_v1 = vld [vmem:[%s1520_s2 + $0xc0] sm:$0xff]   ;;  %1015 = vmatprep.subr.bf16.mxu0 %v1088_v0  ;;  %v1093_v5 = vld [vmem:[%s1520_s2 + $0xc8] sm:$0xff]   ;;  %v1097_v9 = vld [vmem:[%s1520_s2 + $0xd0] sm:$0xff]  }
   0x3   :  { %v1090_v2 = vld [vmem:[%s1520_s2] sm:$0xff]   ;;  %1037 = vmatprep.subr.bf16.mxu1 %v1089_v1  ;;  %v1094_v6 = vld [vmem:[%s1520_s2 + $0x8] sm:$0xff]   ;;  %v1098_v10 = vld [vmem:[%s1520_s2 + $0x10] sm:$0xff]  }
   0x4   :  { %v1091_v3 = vld [vmem:[%s1520_s2 + $0x80] sm:$0xff]   ;;  %1016 = vmatpush3.bf16.msra.mxu0 %v1090_v2  ;;  %v1095_v7 = vld [vmem:[%s1520_s2 + $0x88] sm:$0xff]   ;;  %v1099_v11 = vld [vmem:[%s1520_s2 + $0x90] sm:$0xff]  }
   0x5   :  { %1038 = vmatpush3.bf16.msra.mxu1 %v1091_v3  ;;  %1017 = vmatprep.subr.bf16.mxu0 %v1092_v4  ;;  %v1100_v12 = vld [vmem:[%s1520_s2 + $0x58] sm:$0xff]   ;;  %v1104_v16 = vld [vmem:[%s1520_s2 + $0x60] sm:$0xff]   ;;  %v1108_v20 = vld [vmem:[%s1520_s2 + $0x68] sm:$0xff]  }
   0x6   :  { %1039 = vmatprep.subr.bf16.mxu1 %v1093_v5  ;;  %v1101_v13 = vld [vmem:[%s1520_s2 + $0xd8] sm:$0xff]   ;;  %v1105_v17 = vld [vmem:[%s1520_s2 + $0xe0] sm:$0xff]   ;;  %v1109_v21 = vld [vmem:[%s1520_s2 + $0xe8] sm:$0xff]  }
   0x7   :  { %v1102_v14 = vld [vmem:[%s1520_s2 + $0x18] sm:$0xff]   ;;  %v1106_v18 = vld [vmem:[%s1520_s2 + $0x20] sm:$0xff]   ;;  %v1110_v22 = vld [vmem:[%s1520_s2 + $0x28] sm:$0xff]  }
   0x8   :  { %1018 = vmatpush3.bf16.msra.mxu0 %v1094_v6  ;;  %v1103_v15 = vld [vmem:[%s1520_s2 + $0x98] sm:$0xff]   ;;  %v1107_v19 = vld [vmem:[%s1520_s2 + $0xa0] sm:$0xff]   ;;  %v1111_v23 = vld [vmem:[%s1520_s2 + $0xa8] sm:$0xff]  }
   0x9   :  { %1040 = vmatpush3.bf16.msra.mxu1 %v1095_v7  ;;  %1019 = vmatprep.subr.bf16.mxu0 %v1096_v8  ;;  %v1112_v24 = vld [vmem:[%s1520_s2 + $0x70] sm:$0xff]   ;;  %v1116_v28 = vld [vmem:[%s1520_s2 + $0x78] sm:$0xff]   ;;  %v37_v32 = vld [vmem:[%s1518_s0] sm:$0xff] }
   0xa   :  { %1041 = vmatprep.subr.bf16.mxu1 %v1097_v9  ;;  %v1113_v25 = vld [vmem:[%s1520_s2 + $0xf0] sm:$0xff]   ;;  %v1117_v29 = vld [vmem:[%s1520_s2 + $0xf8] sm:$0xff]   ;;  %v40_v33 = vld [vmem:[%s1519_s1] sm:$0xff]  ;;  %v46_v35 = vcombine.high %v37_v32, %v37_v32 }
   0xb   :  { %v1114_v26 = vld [vmem:[%s1520_s2 + $0x30] sm:$0xff]   ;;  %v1118_v30 = vld [vmem:[%s1520_s2 + $0x38] sm:$0xff]   ;;  %v38_v34 = vld [vmem:[%s1518_s0 + $0x8] sm:$0xff]  ;;  %v55_v36 = vcombine.low %v40_v33, %v40_v33 }
   0xc   :  { %1020 = vmatpush3.bf16.msra.mxu0 %v1098_v10  ;;  %v1115_v27 = vld [vmem:[%s1520_s2 + $0xb0] sm:$0xff]   ;;  %v1119_v31 = vld [vmem:[%s1520_s2 + $0xb8] sm:$0xff]   ;;  %v41_v37 = vld [vmem:[%s1519_s1 + $0x8] sm:$0xff]  ;;  %v47_v38 = vcombine.high %v38_v34, %v38_v34  ;;  %v63_v41 = vsel %vm61_vm0, %v46_v35, %v40_v33 }
   0xd   :  { %1042 = vmatpush3.bf16.msra.mxu1 %v1099_v11  ;;  %1021 = vmatprep.subr.bf16.mxu0 %v1100_v12  ;;  %v56_v39 = vcombine.low %v41_v37, %v41_v37  ;;  %v1124_v40 = vld [vmem:[%s1520_s2 + $0x140] sm:$0xff]   ;;  %v62_v43 = vsel %vm61_vm0, %v37_v32, %v55_v36  ;;  %v69_v44 = vpack.c.bf16 %v63_v41, %v63_v41  ;;  %v1126_v50 = vld [vmem:[%s1520_s2 + $0x148] sm:$0xff]   ;;  %v1128_v52 = vld [vmem:[%s1520_s2 + $0x150] sm:$0xff]  }
   0xe   :  { %1043 = vmatprep.subr.bf16.mxu1 %v1101_v13  ;;  %v65_v42 = vsel %vm61_vm0, %v47_v38, %v41_v37  ;;  %v68_v46 = vpack.c.bf16 %v62_v43, %v62_v43  ;;  %v1125_v48 = vld [vmem:[%s1520_s2 + $0x100] sm:$0xff]   ;;  %v1127_v51 = vld [vmem:[%s1520_s2 + $0x108] sm:$0xff]   ;;  %v1129_v53 = vld [vmem:[%s1520_s2 + $0x110] sm:$0xff]  }
   0xf   :  { %v71_v45 = vpack.c.bf16 %v65_v42, %v65_v42  ;;  %v64_v47 = vsel %vm61_vm0, %v38_v34, %v56_v39  ;;  %491 = vmatprep.mubr.bf16.mxu0 %v69_v44  ;;  %v1130_v54 = vld [vmem:[%s1520_s2 + $0x158] sm:$0xff]   ;;  %v1132_v56 = vld [vmem:[%s1520_s2 + $0x160] sm:$0xff]   ;;  %v39_v57 = vld [vmem:[%s1518_s0 + $0x10] sm:$0xff] }
  0x10   :  { %1022 = vmatpush3.bf16.msra.mxu0 %v1102_v14  ;;  %v70_v49 = vpack.c.bf16 %v64_v47, %v64_v47  ;;  %v1131_v55 = vld [vmem:[%s1520_s2 + $0x118] sm:$0xff]   ;;  %v42_v58 = vld [vmem:[%s1519_s1 + $0x10] sm:$0xff]  ;;  %v48_v59 = vcombine.high %v39_v57, %v39_v57 }
  0x11   :  { %1044 = vmatpush3.bf16.msra.mxu1 %v1103_v15  ;;  %1023 = vmatprep.subr.bf16.mxu0 %v1104_v16 }
  0x12   :  { %1045 = vmatprep.subr.bf16.mxu1 %v1105_v17  ;;  %531 = vmatprep.mubr.bf16.mxu1 %v71_v45 }
  0x14   :  { %1024 = vmatpush3.bf16.msra.mxu0 %v1106_v18 }
  0x15   :  { %1046 = vmatpush3.bf16.msra.mxu1 %v1107_v19  ;;  %1025 = vmatprep.subr.bf16.mxu0 %v1108_v20 }
  0x16   :  { %1047 = vmatprep.subr.bf16.mxu1 %v1109_v21 }
  0x18   :  { %1026 = vmatpush3.bf16.msra.mxu0 %v1110_v22 }
  0x19   :  { %1048 = vmatpush3.bf16.msra.mxu1 %v1111_v23  ;;  %1027 = vmatprep.subr.bf16.mxu0 %v1112_v24 }
  0x1a   :  { %1049 = vmatprep.subr.bf16.mxu1 %v1113_v25 }
  0x1c   :  { %1028 = vmatpush3.bf16.msra.mxu0 %v1114_v26 }
  0x1d   :  { %1050 = vmatpush3.bf16.msra.mxu1 %v1115_v27  ;;  %1029 = vmatprep.subr.bf16.mxu0 %v1116_v28 }
  0x1e   :  { %1051 = vmatprep.subr.bf16.mxu1 %v1117_v29 }
  0x20   :  { %1030 = vmatpush3.bf16.msra.mxu0 %v1118_v30 }
  0x21   :  { %1052 = vmatpush3.bf16.msra.mxu1 %v1119_v31  ;;  %1059 = vmatprep.subr.bf16.mxu0 %v1124_v40 }
  0x23   :  { %492 = vmatmul.mubr.bf16.vlgmr.msra.gmra.mrb[0].mxu0 %v68_v46 }
  0x24   :  { %532 = vmatmul.mubr.bf16.vlgmr.msra.gmra.mrb[0].mxu1 %v70_v49  ;;  %1060 = vmatpush3.bf16.msra.mxu0 %v1125_v48 }
  0x25   :  { %1061 = vmatprep.subr.bf16.mxu0 %v1126_v50 }
  0x28   :  { %1062 = vmatpush3.bf16.msra.mxu0 %v1127_v51 }
  0x29   :  { %1063 = vmatprep.subr.bf16.mxu0 %v1128_v52 }
  0x2c   :  { %1064 = vmatpush3.bf16.msra.mxu0 %v1129_v53 }
  0x2d   :  { %1065 = vmatprep.subr.bf16.mxu0 %v1130_v54 }
  0x2e   :  { %11 = vsyncpa [#allocation4], 0  ;;  %v1133_v60 = vld [vmem:[%s1520_s2 + $0x120] sm:$0xff]   ;;  %v67_v61 = vsel %vm61_vm0, %v48_v59, %v42_v58  ;;  %v1134_v62 = vld [vmem:[%s1520_s2 + $0x168] sm:$0xff]   ;;  %v57_v3 = vcombine.low %v42_v58, %v42_v58  ;;  %v1214_v29 = vmov 1966171168   ;;  %v606_v31 = vlaneseq }
  0x2f   :  { %v73_v63 = vpack.c.bf16 %v67_v61, %v67_v61  ;;  %v1135_v0 = vld [vmem:[%s1520_s2 + $0x128] sm:$0xff]   ;;  %v1136_v1 = vld [vmem:[%s1520_s2 + $0x170] sm:$0xff]   ;;  %v1138_v4 = vld [vmem:[%s1520_s2 + $0x178] sm:$0xff]   ;;  %v604_v30 = vunpack.c.l.s4 %v1214_v29  ;;  %vm597_vm1 = vcmask 1047556   ;;  %vm912_vm14 = vcmask 1041409  }
  0x30   :  { %1066 = vmatpush3.bf16.msra.mxu0 %v1131_v55  ;;  %v1137_v2 = vld [vmem:[%s1520_s2 + $0x130] sm:$0xff]   ;;  %v1139_v5 = vld [vmem:[%s1520_s2 + $0x138] sm:$0xff]   ;;  %v66_v6 = vsel %vm61_vm0, %v39_v57, %v57_v3  ;;  %v966_v24 = vld [vmem:[%s1521_s3] ss:$0 sm:$0xff]  ;;  %v1424_v33 = vshrl.u32 %v606_v31, 7  ;;  %vm914_vm15 = vcmask 1042434  }
  0x31   :  { %1067 = vmatprep.subr.bf16.mxu0 %v1132_v56  ;;  %571 = vmatprep.mubr.bf16.mxu0 %v73_v63  ;;  %v72_v7 = vpack.c.bf16 %v66_v6, %v66_v6  ;;  %v605_v32 = vunpack.c.0.s8 %v604_v30  ;;  %v1432_v36 = vld [vmem:[%s1522_s4] sm:$0xff]  ;;  %s1216_s4 = smov [#allocation3]  }
  0x32   :  { %v1438_v41 = vsub.s32 0, %v1424_v33  ;;  %v591_v44 = vld [vmem:[%s1523_s5] sm:$0xf]  ;;  %s958_s5 = sshll.u32 %s1216_s4, 4  ;;  %s959_s5 = int_to_ptr.vmem [resolvable:$true] %s958_s5 }
  0x33   :  { %v1427_v34 = vsub.s32 %v605_v32, %v1424_v33  ;;  %s1190_s13 = scalar_lea.vmem %s959_s5, 16  ;;  %s1194_s14 = scalar_lea.vmem %s959_s5, 32 }
  0x34   :  { %1068 = vmatpush3.bf16.msra.mxu0 %v1133_v60  ;;  %p1191_p0 = scmp.ne.s32.totalorder %s959_s5, %s1190_s13  ;;  %p1195_p1 = scmp.lt.s32.totalorder %s959_s5, %s959_s5 }
  0x35   :  { %1069 = vmatprep.subr.bf16.mxu0 %v1134_v62  ;;  %v609_v38 = vrot.slane %v1432_v36, %v1427_v34  ;;  %p1196_p2 = scmp.lt.s32.totalorder %s1194_s14, %s1190_s13 }
  0x37   :  { %v617_v40 = vrot.slane %v609_v38, %v1427_v34  ;;  %v610_v47 = vcombine.high %v609_v38, %v609_v38  ;;  %p1197_p3 = por %p1196_p2, %p1195_p1 }
  0x38   :  { %1070 = vmatpush3.bf16.msra.mxu0 %v1135_v0 }
  0x39   :  { %1071 = vmatprep.subr.bf16.mxu0 %v1136_v1  ;;  %v630_v43 = vrot.slane %v617_v40, %v1438_v41  ;;  %v624_v50 = vrot.slane %v610_v47, %v1427_v34  ;;  %v625_v6 = vcombine.high %v617_v40, %v617_v40  ;;  %p1198_p4 = pnand %p1197_p3, %p1191_p0 }
  0x3b   :  { %v647_v46 = vsub.f32 %v591_v44, %v630_v43  ;;  %v634_v52 = vrot.slane %v624_v50, %v1438_v41  ;;  %v626_v59 = vcombine.high %v624_v50, %v624_v50 }
  0x3c   :  { %1072 = vmatpush3.bf16.msra.mxu0 %v1137_v2 }
  0x3d   :  { %1073 = vmatprep.subr.bf16.mxu0 %v1138_v4  ;;  %v651_v49 = vmul.f32 %v647_v46, %v647_v46  ;;  %v648_v54 = vsub.f32 %v591_v44, %v634_v52  ;;  %v642_v62 = vrot.slane %v626_v59, %v1438_v41 }
  0x3f   :  { %v655_v51 = vsel %vm61_vm0, %v651_v49, 0.0  ;;  %v652_v56 = vmul.f32 %v648_v54, %v648_v54  ;;  %v650_v1 = vsub.f32 %v591_v44, %v642_v62 }
  0x40   :  { %1074 = vmatpush3.bf16.msra.mxu0 %v1139_v5  ;;  %v656_v53 = vrot.slane %v655_v51, 4 }
  0x41   :  { %v662_v58 = vsel %vm61_vm0, %v652_v56, 0.0  ;;  %v654_v4 = vmul.f32 %v650_v1, %v650_v1 }
  0x42   :  { %v657_v55 = vadd.f32 %v656_v53, %v655_v51  ;;  %v663_v61 = vrot.slane %v662_v58, 4 }
  0x43   :  { %572 = vmatmul.mubr.bf16.vlgmr.msra.gmra.mrb[4].mxu0 %v72_v7  ;;  %v676_v7 = vsel %vm61_vm0, %v654_v4, 0.0 }
  0x44   :  { %v658_v57 = vrot.slane %v657_v55, 2  ;;  %v664_v0 = vadd.f32 %v663_v61, %v662_v58 }
  0x46   :  { %v659_v60 = vadd.f32 %v658_v57, %v657_v55  ;;  %v665_v3 = vrot.slane %v664_v0, 2 }
  0x48   :  { %v660_v63 = vrot.slane %v659_v60, 1  ;;  %v666_v5 = vadd.f32 %v665_v3, %v664_v0 }
  0x4a   :  { %v661_v2 = vadd.f32 %v660_v63, %v659_v60  ;;  %v593_v60 = vrot.slane %v1432_v36, 4 }
  0xf6   :  { %v1031_v8 = vpop.f32.mrb[0].mxu0 }
  0xf7   :  { %v1053_v9 = vpop.f32.mrb[0].mxu1  ;;  %v1032_v10 = vpop.f32.mrb[1].mxu0 }
  0xf8   :  { %v1054_v11 = vpop.f32.mrb[1].mxu1  ;;  %v1033_v12 = vadd.f32 %v1032_v10, %v1031_v8  ;;  %v1034_v14 = vpop.f32.mrb[2].mxu0  ;;  %v667_v8 = vrot.slane %v666_v5, 1  ;;  %v638_v10 = vrot.slane %v625_v6, %v1438_v41 }
  0xf9   :  { %v1055_v13 = vadd.f32 %v1054_v11, %v1053_v9  ;;  %v1056_v15 = vpop.f32.mrb[2].mxu1  ;;  %v1035_v16 = vpop.f32.mrb[3].mxu0  ;;  %v677_v9 = vrot.slane %v676_v7, 4 }
  0xfa   :  { %v1057_v17 = vpop.f32.mrb[3].mxu1  ;;  %v668_v11 = vadd.f32 %v667_v8, %v666_v5 }
  0xfb   :  { %v534_v18 = vadd.f32 %v1055_v13, %v1033_v12  ;;  %v678_v12 = vadd.f32 %v677_v9, %v676_v7  ;;  %v649_v13 = vsub.f32 %v591_v44, %v638_v10 }
  0xfd   :  { %v679_v14 = vrot.slane %v678_v12, 2  ;;  %v653_v30 = vmul.f32 %v649_v13, %v649_v13 }
  0xff   :  { %v680_v15 = vadd.f32 %v679_v14, %v678_v12  ;;  %v669_v32 = vsel %vm61_vm0, %v653_v30, 0.0 }
 0x101   :  { %v681_v17 = vrot.slane %v680_v15, 1 }
 0x116   :  { %v1075_v19 = vpop.f32.mrb[4].mxu0 }
 0x117   :  { %v1076_v20 = vpop.f32.mrb[5].mxu0 }
 0x118   :  { %v1077_v21 = vadd.f32 %v1076_v20, %v1075_v19  ;;  %v1078_v22 = vpop.f32.mrb[6].mxu0  ;;  %v682_v19 = vadd.f32 %v681_v17, %v680_v15  ;;  %v1215_v15 = vmov 0  }
 0x119   :  { %v1079_v23 = vpop.f32.mrb[7].mxu0  ;;  %1087 = vset.pattern.permute.xlu1 %v1215_v15  ;;  %1086 = vset.pattern.permute.xlu0 %v1215_v15 }
 0x11a   :  { %v574_v25 = vadd.f32 %v1077_v21, %v534_v18 }
 0x11c   :  { %v579_v26 = vadd.f32 %v966_v24, %v574_v25 }
 0x11e   :  { %v585_v27 = vmul.f32 %v579_v26, %v579_v26 }
 0x120   :  { %586 = vadd.xlane.f32.xlu0 %v585_v27 }
 0x1ad   :  { %v587_v28 = vpop.xlane.xlu0 %586 }
 0x1ae   :  { %1142 = vrsqrt.f32 %v587_v28 }
 0x1af   :  { %1144 = vrsqrt.f32 %v661_v2  ;;  %v1475_v2 = vsub.f32 %v1432_v36, %v593_v60 }
 0x1b0   :  { %1146 = vrsqrt.f32 %v668_v11 }
 0x1b1   :  { %1148 = vrsqrt.f32 %v682_v19  ;;  %v596_v36 = vmul.f32 %v1475_v2, %v1475_v2 }
 0x1b3   :  { %v598_v14 = vsel %vm597_vm1, %v596_v36, 0.0 }
 0x1b8   :  { %v1143_v35 = vpop.eup %1142 }
 0x1b9   :  { %v589_v37 = vmul.f32 %v1143_v35, %v579_v26  ;;  %v1145_v16 = vpop.eup %1144  ;;  %v670_v35 = vrot.slane %v669_v32, 4 }
 0x1ba   :  { %v687_v18 = vmul.f32 %v1145_v16, %v647_v46  ;;  %v1147_v22 = vpop.eup %1146 }
 0x1bb   :  { %v692_v39 = vrot.slane %v589_v37, 4  ;;  %v688_v23 = vmul.f32 %v1147_v22, %v648_v54  ;;  %v1149_v26 = vpop.eup %1148 }
 0x1bc   :  { %v727_v20 = vmul.f32 %v687_v18, %v687_v18  ;;  %v690_v27 = vmul.f32 %v1149_v26, %v650_v1 }
 0x1bd   :  { %v1440_v42 = vsub.f32 %v589_v37, %v692_v39  ;;  %v728_v24 = vmul.f32 %v688_v23, %v688_v23  ;;  %v671_v37 = vadd.f32 %v670_v35, %v669_v32 }
 0x1be   :  { %v731_v21 = vsel %vm61_vm0, %v727_v20, 0.0  ;;  %v730_v28 = vmul.f32 %v690_v27, %v690_v27 }
 0x1bf   :  { %v695_v45 = vmul.f32 %v1440_v42, %v1440_v42  ;;  %732 = vadd.xlane.f32.xlu1 %v731_v21  ;;  %v734_v25 = vsel %vm61_vm0, %v728_v24, 0.0  ;;  %v672_v38 = vrot.slane %v671_v37, 2 }
 0x1c0   :  { %v740_v29 = vsel %vm61_vm0, %v730_v28, 0.0 }
 0x1c1   :  { %v696_v48 = vsel %vm597_vm1, %v695_v45, 0.0  ;;  %v673_v40 = vadd.f32 %v672_v38, %v671_v37  ;;  %v836_v37 = vsub.s32 4, %v1424_v33  ;;  %v840_v38 = vsub.s32 5, %v1424_v33 }
 0x1c2   :  { %697 = vadd.xlane.f32.xlu0 %v696_v48 }
 0x1c3   :  { %v674_v43 = vrot.slane %v673_v40, 1 }
 0x1c5   :  { %v675_v44 = vadd.f32 %v674_v43, %v673_v40  ;;  %v848_v43 = vsub.s32 7, %v1424_v33 }
 0x1c6   :  { %735 = vadd.xlane.f32.xlu0 %v734_v25 }
 0x1ca   :  { %741 = vadd.xlane.f32.xlu0 %v740_v29 }
 0x24c   :  { %v733_v16 = vpop.xlane.xlu1 %732 }
 0x24d   :  { %vm745_vm4 = vcmp.eq.f32.partialorder %v733_v16, inf  ;;  %vm747_vm6 = vcmp.eq.f32.partialorder %v733_v16, 0.0  ;;  %v748_v26 = vand.u32 2147483648, %v733_v16 }
 0x24f   :  { %v698_v39 = vpop.xlane.xlu0 %697 }
 0x250   :  { %1150 = vrsqrt.f32 %v698_v39  ;;  %vm701_vm2 = vcmp.eq.f32.partialorder %v698_v39, inf  ;;  %v704_v47 = vand.u32 2147483648, %v698_v39  ;;  %vm703_vm3 = vcmp.eq.f32.partialorder %v698_v39, 0.0 }
 0x251   :  { %1152 = vrsqrt.f32 %v675_v44 }
 0x25a   :  { %v1151_v45 = vpop.eup %1150 }
 0x25b   :  { %v700_v46 = vmul.f32 %v1151_v45, %v698_v39  ;;  %v1153_v51 = vpop.eup %1152  ;;  %v844_v45 = vsub.s32 6, %v1424_v33 }
 0x25c   :  { %v689_v52 = vmul.f32 %v1153_v51, %v649_v13 }
 0x25d   :  { %v702_v48 = vsel %vm701_vm2, %v698_v39, %v700_v46  ;;  %vm919_vm2 = vcmask 27648  }
 0x25e   :  { %v705_v49 = vsel %vm703_vm3, %v704_v47, %v702_v48  ;;  %v729_v56 = vmul.f32 %v689_v52, %v689_v52  ;;  %vm950_vm3 = vcmask 0  }
 0x25f   :  { %v706_v50 = vadd.f32 1e-07, %v705_v49 }
 0x260   :  { %v737_v61 = vsel %vm61_vm0, %v729_v56, 0.0 }
 0x261   :  { %1154 = vrcp.f32 %v706_v50 }
 0x262   :  { %1156 = vrsqrt.f32 %v733_v16 }
 0x26b   :  { %v1155_v53 = vpop.eup %1154 }
 0x26c   :  { %v1461_v54 = vmul.f32 %v1155_v53, %v1440_v42  ;;  %v1157_v19 = vpop.eup %1156 }
 0x26e   :  { %v709_v55 = vmul.f32 %v1461_v54, %v1461_v54  ;;  %v772_v57 = vcombine.high %v1461_v54, %v1461_v54 }
 0x270   :  { %v710_v58 = vsel %vm597_vm1, %v709_v55, 0.0  ;;  %v779_v59 = vrot.slane %v772_v57, %v1427_v34 }
 0x271   :  { %711 = vadd.xlane.f32.xlu1 %v710_v58 }
 0x272   :  { %v787_v62 = vrot.slane %v779_v59, %v1427_v34  ;;  %v780_v42 = vcombine.high %v779_v59, %v779_v59 }
 0x274   :  { %v800_v63 = vrot.slane %v787_v62, %v1438_v41  ;;  %v794_v0 = vrot.slane %v780_v42, %v1427_v34  ;;  %v795_v1 = vcombine.high %v787_v62, %v787_v62 }
 0x275   :  { %738 = vadd.xlane.f32.xlu1 %v737_v61 }
 0x276   :  { %v817_v3 = vmul.f32 %v800_v63, %v687_v18  ;;  %v804_v4 = vrot.slane %v794_v0, %v1438_v41  ;;  %v808_v5 = vrot.slane %v795_v1, %v1438_v41  ;;  %v796_v6 = vcombine.high %v794_v0, %v794_v0 }
 0x278   :  { %v821_v7 = vsel %vm61_vm0, %v817_v3, 0.0  ;;  %v818_v8 = vmul.f32 %v804_v4, %v688_v23  ;;  %v819_v9 = vmul.f32 %v808_v5, %v689_v52  ;;  %v812_v10 = vrot.slane %v796_v6, %v1438_v41  ;;  %v736_v41 = vpop.xlane.xlu0 %735 }
 0x279   :  { %822 = vadd.xlane.f32.xlu1 %v821_v7  ;;  %1158 = vrsqrt.f32 %v736_v41  ;;  %v744_v23 = vmul.f32 %v1157_v19, %v733_v16  ;;  %vm752_vm5 = vcmp.eq.f32.partialorder %v736_v41, inf  ;;  %vm754_vm7 = vcmp.eq.f32.partialorder %v736_v41, 0.0 }
 0x27a   :  { %v824_v34 = vsel %vm61_vm0, %v818_v8, 0.0  ;;  %v820_v11 = vmul.f32 %v812_v10, %v690_v27  ;;  %v827_v12 = vsel %vm61_vm0, %v819_v9, 0.0  ;;  %v755_v29 = vand.u32 2147483648, %v736_v41 }
 0x27b   :  { %825 = vadd.xlane.f32.xlu0 %v824_v34  ;;  %v746_v28 = vsel %vm745_vm4, %v733_v16, %v744_v23 }
 0x27c   :  { %v830_v13 = vsel %vm61_vm0, %v820_v11, 0.0  ;;  %v742_v17 = vpop.xlane.xlu0 %741  ;;  %v749_v48 = vsel %vm747_vm6, %v748_v26, %v746_v28  ;;  %v895_v26 = vand.u32 127, %v606_v31  ;;  %vm916_vm0 = vcmask 1043459  }
 0x27d   :  { %828 = vadd.xlane.f32.xlu1 %v827_v12  ;;  %1160 = vrsqrt.f32 %v742_v17  ;;  %vm766_vm8 = vcmp.eq.f32.partialorder %v742_v17, inf  ;;  %vm768_vm9 = vcmp.eq.f32.partialorder %v742_v17, 0.0  ;;  %v769_v30 = vand.u32 2147483648, %v742_v17 }
 0x27e   :  { %v898_v28 = vsub.s32 %v895_v26, %v1424_v33 }
 0x27f   :  { %831 = vadd.xlane.f32.xlu0 %v830_v13 }
 0x281   :  { %599 = vadd.xlane.f32.xlu1 %v598_v14 }
 0x283   :  { %v1159_v21 = vpop.eup %1158 }
 0x284   :  { %v751_v24 = vmul.f32 %v1159_v21, %v736_v41 }
 0x286   :  { %v753_v32 = vsel %vm752_vm5, %v736_v41, %v751_v24 }
 0x287   :  { %v1161_v22 = vpop.eup %1160  ;;  %v756_v49 = vsel %vm754_vm7, %v755_v29, %v753_v32 }
 0x288   :  { %v765_v25 = vmul.f32 %v1161_v22, %v742_v17 }
 0x28a   :  { %v767_v39 = vsel %vm766_vm8, %v742_v17, %v765_v25 }
 0x28b   :  { %v770_v53 = vsel %vm768_vm9, %v769_v30, %v767_v39 }
 0x2fe   :  { %v712_v18 = vpop.xlane.xlu1 %711 }
 0x2ff   :  { %1162 = vrsqrt.f32 %v712_v18  ;;  %vm715_vm10 = vcmp.eq.f32.partialorder %v712_v18, inf  ;;  %v718_v40 = vand.u32 2147483648, %v712_v18  ;;  %vm717_vm11 = vcmp.eq.f32.partialorder %v712_v18, 0.0 }
 0x302   :  { %v739_v20 = vpop.xlane.xlu1 %738 }
 0x303   :  { %1164 = vrsqrt.f32 %v739_v20  ;;  %vm759_vm12 = vcmp.eq.f32.partialorder %v739_v20, inf  ;;  %vm761_vm13 = vcmp.eq.f32.partialorder %v739_v20, 0.0  ;;  %v762_v55 = vand.u32 2147483648, %v739_v20 }
 0x306   :  { %v823_v4 = vpop.xlane.xlu1 %822 }
 0x308   :  { %v826_v5 = vpop.xlane.xlu0 %825 }
 0x309   :  { %v1163_v27 = vpop.eup %1162 }
 0x30a   :  { %v714_v35 = vmul.f32 %v1163_v27, %v712_v18  ;;  %v829_v34 = vpop.xlane.xlu1 %828 }
 0x30c   :  { %v716_v44 = vsel %vm715_vm10, %v712_v18, %v714_v35  ;;  %v832_v14 = vpop.xlane.xlu0 %831 }
 0x30d   :  { %v1165_v46 = vpop.eup %1164  ;;  %v1491_v47 = vsel %vm717_vm11, %v718_v40, %v716_v44 }
 0x30e   :  { %v758_v50 = vmul.f32 %v1165_v46, %v739_v20  ;;  %v837_v51 = vrot.slane %v1491_v47, %v836_v37  ;;  %v841_v52 = vrot.slane %v1491_v47, %v840_v38  ;;  %v849_v56 = vrot.slane %v1491_v47, %v848_v43  ;;  %v600_v21 = vpop.xlane.xlu1 %599 }
 0x30f   :  { %v845_v60 = vrot.slane %v1491_v47, %v844_v45  ;;  %v724_v31 = vmax.f32 %v1491_v47, 1e-08 }
 0x310   :  { %v760_v57 = vsel %vm759_vm12, %v739_v20, %v758_v50  ;;  %v854_v58 = vmul.f32 %v837_v51, %v749_v48  ;;  %v855_v59 = vmul.f32 %v841_v52, %v756_v49  ;;  %v857_v62 = vmul.f32 %v849_v56, %v770_v53 }
 0x311   :  { %v763_v61 = vsel %vm761_vm13, %v762_v55, %v760_v57 }
 0x312   :  { %v858_v42 = vmax.f32 %v854_v58, 1e-08  ;;  %v859_v63 = vmax.f32 %v855_v59, 1e-08  ;;  %v856_v0 = vmul.f32 %v845_v60, %v763_v61  ;;  %v861_v1 = vmax.f32 %v857_v62, 1e-08 }
 0x314   :  { %1166 = vrcp.f32 %v858_v42  ;;  %v860_v3 = vmax.f32 %v856_v0, 1e-08 }
 0x315   :  { %1168 = vrcp.f32 %v859_v63 }
 0x316   :  { %1170 = vrcp.f32 %v860_v3 }
 0x317   :  { %1172 = vrcp.f32 %v861_v1 }
 0x31e   :  { %v1167_v6 = vpop.eup %1166 }
 0x31f   :  { %v1169_v7 = vpop.eup %1168  ;;  %v863_v8 = vmul.f32 %v1167_v6, %v823_v4 }
 0x320   :  { %v1171_v9 = vpop.eup %1170  ;;  %v865_v10 = vmul.f32 %v1169_v7, %v826_v5 }
 0x321   :  { %v1173_v11 = vpop.eup %1172  ;;  %v870_v36 = vmul.f32 1.442695, %v863_v8  ;;  %v867_v12 = vmul.f32 %v1171_v9, %v829_v34 }
 0x322   :  { %v872_v13 = vmul.f32 1.442695, %v865_v10  ;;  %v869_v41 = vmul.f32 %v1173_v11, %v832_v14 }
 0x323   :  { %1174 = vpow2.f32 %v870_v36  ;;  %v874_v15 = vmul.f32 1.442695, %v867_v12 }
 0x324   :  { %1176 = vpow2.f32 %v872_v13  ;;  %v876_v16 = vmul.f32 1.442695, %v869_v41 }
 0x325   :  { %1178 = vpow2.f32 %v874_v15 }
 0x326   :  { %1180 = vpow2.f32 %v876_v16 }
 0x327   :  { %1182 = vrsqrt.f32 %v600_v21 }
 0x328   :  { %1184 = vrcp.f32 %v724_v31 }
 0x32d   :  { %v1175_v17 = vpop.eup %1174 }
 0x32e   :  { %v1177_v18 = vpop.eup %1176  ;;  %883 = vperm.xlu0 %1086, %v1175_v17  }
 0x32f   :  { %886 = vperm.xlu1 %1087, %v1177_v18   ;;  %v1179_v19 = vpop.eup %1178 }
 0x330   :  { %v1181_v20 = vpop.eup %1180 }
 0x331   :  { %v1183_v22 = vpop.eup %1182 }
 0x332   :  { %v602_v23 = vmul.f32 %v1183_v22, %v1475_v2  ;;  %v1185_v44 = vpop.eup %1184 }
 0x333   :  { %889 = vperm.xlu1 %1087, %v1179_v19  }
 0x334   :  { %v720_v24 = vmul.f32 %v1461_v54, %v602_v23 }
 0x336   :  { %v721_v25 = vsel %vm597_vm1, %v720_v24, 0.0  ;;  %vm935_vm1 = vcmask 3072  }
 0x337   :  { %892 = vperm.xlu1 %1087, %v1181_v20  }
 0x35b   :  { %722 = vadd.xlane.f32.xlu1 %v721_v25 }
 0x3ad   :  { %v884_v29 = vpop.permute.xlu0 %883 }
 0x3ae   :  { %v887_v27 = vpop.permute.xlu1 %886  ;;  %v899_v35 = vrot.slane %v884_v29, %v898_v28 }
 0x3af   :  { %v903_v32 = vrot.slane %v887_v27, %v898_v28 }
 0x3b1   :  { %v913_v2 = vsel %vm912_vm14, %v903_v32, %v899_v35 }
 0x3b2   :  { %v890_v30 = vpop.permute.xlu1 %889 }
 0x3b3   :  { %v907_v37 = vrot.slane %v890_v30, %v898_v28 }
 0x3b5   :  { %v915_v54 = vsel %vm914_vm15, %v907_v37, %v913_v2 }
 0x3b6   :  { %v893_v38 = vpop.permute.xlu1 %892 }
 0x3b7   :  { %v911_v39 = vrot.slane %v893_v38, %v898_v28 }
 0x3b9   :  { %v917_v40 = vsel %vm916_vm0, %v911_v39, %v915_v54 }
 0x3ba   :  { %v920_v43 = vsel %vm919_vm2, %v917_v40, 0.0 }
 0x3bb   :  { %921 = vadd.xlane.f32.xlu0 %v920_v43 }
 0x3e8   :  { %v723_v33 = vpop.xlane.xlu1 %722 }
 0x3e9   :  { %v726_v45 = vmul.f32 %v1185_v44, %v723_v33 }
 0x3eb   :  { %v923_v46 = vmul.f32 1.442695, %v726_v45 }
 0x3ed   :  { %1186 = vpow2.f32 %v923_v46 }
 0x3f7   :  { %v1187_v50 = vpop.eup %1186 }
 0x448   :  { %v922_v48 = vpop.xlane.xlu0 %921 }
 0x449   :  { %v926_v49 = vrot.slane %v922_v48, 4 }
 0x44b   :  { %v928_v51 = vadd.f32 %v1187_v50, %v926_v49 }
 0x44d   :  { %1188 = vlog2.f32 %v928_v51 }
 0x457   :  { %v1189_v52 = vpop.eup %1188 }
 0x458   :  { %v930_v53 = vmul.f32 0.6931472, %v1189_v52 }
 0x45a   :  { %v931_v55 = vsub.f32 %v930_v53, %v726_v45 }
 0x45c   :  { %v933_v56 = vrot.slane %v931_v55, 4 }
 0x45e   :  { %v936_v57 = vsel %vm935_vm1, %v933_v56, 0.0 }
 0x45f   :  { %937 = vadd.xlane.f32.xlu1 %v936_v57 }
 0x4ec   :  { %v938_v58 = vpop.xlane.xlu1 %937 }
 0x4ed   :  { %v939_v47 = vrot.slane %v938_v58, 4 }
 0x4ef   :  { %v940_v59 = vadd.f32 %v939_v47, %v938_v58 }
 0x4f1   :  { %v941_v60 = vrot.slane %v940_v59, 2 }
 0x4f3   :  { %v942_v61 = vadd.f32 %v941_v60, %v940_v59 }
 0x4f5   :  { %v943_v62 = vrot.slane %v942_v61, 1 }
 0x4f7   :  { %v944_v42 = vadd.f32 %v943_v62, %v942_v61 }
 0x4f9   :  { %1081 = vpush %v944_v42 }
 0x52a   :  { %s1082_s11 = spop %1081 }
 0x52b   :  { %s948_s12 = smul.f32 0.25, %s1082_s11 }
 0x52d   :  { %v949_v63 = vstv %s948_s12 }
 0x52e   :  { %951 = vst.msk [vmem:[#allocation3] sm:$0x1] %vm950_vm3, %v949_v63 }
 0x52f   :  { %1201 = shalt.err (!%p1198_p4)
}
 0x530   :  { %s1202_s17 = scalar_lea.hbm %s1524_s6, 16 }
 0x531   :  { %p1203_p5 = scmp.ne.s32.totalorder %s1524_s6, %s1202_s17  ;;  %p1206_p6 = scmp.lt.u32.totalorder %s1202_s17, %s1524_s6 }
 0x533   :  { %p1208_p7 = pnand %p1206_p6, %p1203_p5 }
 0x535   :  { %1211 = shalt.err (!%p1208_p7)
}
 0x536   :  { %961 = dma.vmem_to_hbm [thread:$0]  %s959_s5, 16, %s1524_s6, [#allocation4]  }
 0x537   :  { %1212 = dma.done.wait [#allocation4], 16  }
 0x538   :  { %1213 = vsyncadd [#allocation4], 4294967280 }
 0x539   :  { %965 = vsyncpa [#allocation4], 1 }

</bundles_post_ra>
